<compile_context>
chip_gen: v6e
topology: v6e:2x2x1
jax: 0.10.0
libtpu: 0.0.40
codegen_flags: <defaults>
</compile_context>

<pallas_src>
import functools

import jax
import jax.numpy as jnp
from jax.experimental import pallas as pl
from jax.experimental.pallas import tpu as pltpu


def _round_up(a, b):
    return ((a + b - 1) // b) * b


def _group_norm_kernel(x_ref, gmean_ref, gback_ref, gscale_ref, b_ref, o_ref, *, eps):
    """Per-row group norm on lane-packed tiles.

    x_ref:      (bn, Cp)  packed input rows (P original rows per packed row)
    gmean_ref:  (Cp, Gp)  block-diag group membership scaled by 1/group_feature
    gback_ref:  (Gp, Cp)  membership transpose (broadcast group -> channels)
    gscale_ref: (Gp, Cp)  membership transpose with gamma folded in
    b_ref:      (1, Cp)   beta, lane-tiled
    o_ref:      (bn, Cp)  packed output rows
    """
    x = x_ref[...].astype(jnp.float32)

    # Per-row, per-group mean via MXU (1/group_feature folded into gmean_ref).
    mean_g = jnp.dot(x, gmean_ref[...], preferred_element_type=jnp.float32)
    mean_c = jnp.dot(mean_g, gback_ref[...], preferred_element_type=jnp.float32)

    diff = x - mean_c
    # Stable two-pass biased variance: mean((x - mean)^2) per group.
    var_g = jnp.dot(diff * diff, gmean_ref[...], preferred_element_type=jnp.float32)
    rstd_g = jax.lax.rsqrt(var_g + eps)  # EUP
    # Broadcast back with gamma folded: scale_c[c] = rstd[group(c)] * gamma[c].
    scale_c = jnp.dot(rstd_g, gscale_ref[...], preferred_element_type=jnp.float32)

    # Single fused multiply-add output pass (keeps one vst stream; v5e has 1 slot).
    o_ref[...] = (diff * scale_c + b_ref[...]).astype(o_ref.dtype)


def group_norm_pallas(x_2d, weight, bias, num_groups, eps=1e-5, block_n=4096):
    """Group norm over rows of x_2d with shape (N, C), matching F.group_norm."""
    N, C = x_2d.shape
    G = num_groups
    assert C % G == 0, "num_channels must be divisible by num_groups"
    group_feature = C // G

    if weight is None:
        weight = jnp.ones((C,), dtype=jnp.float32)
    if bias is None:
        bias = jnp.zeros((C,), dtype=jnp.float32)

    # Lane packing: put P consecutive rows in the 128-wide lane dim.
    P = 128 // C if (C <= 128 and 128 % C == 0) else 1
    Cp = C * P
    Gp = G * P

    # Pad packed rows only to a multiple of 8 (sublane constraint); the grid
    # uses cdiv so the last block may be ragged (Pallas clips the DMA).
    np_rows = max(pl.cdiv(N, P), 1)
    np8 = _round_up(np_rows, 8)
    N_pad = np8 * P

    x_pad = x_2d
    if N_pad != N:
        x_pad = jnp.pad(x_2d, ((0, N_pad - N), (0, 0)))
    # NOTE: relayout copy (see TODO at top of file).
    x_packed = x_pad.reshape(np8, Cp)

    # Block row count: large to amortize per-step overhead, but keep >= 2 grid
    # steps when there is enough data so both v7x TensorCores get work.
    bn = min(_round_up(block_n, 8), np8)
    if np8 >= 16 and pl.cdiv(np8, bn) < 2:
        bn = max(8, _round_up(pl.cdiv(np8, 2), 8))
    grid = (pl.cdiv(np8, bn),)

    # Group membership matrices (block-diagonal across the P packed copies).
    ch = jnp.arange(C)
    member = (ch[:, None] // group_feature == jnp.arange(G)[None, :]).astype(jnp.float32)  # (C, G)
    member_big = jnp.kron(jnp.eye(P, dtype=jnp.float32), member)    # (Cp, Gp)
    gmean = member_big * (1.0 / float(group_feature))               # folds 1/group_feature
    gback = member_big.T                                            # (Gp, Cp)
    w_tiled = jnp.tile(weight.astype(jnp.float32), P)               # (Cp,)
    gscale = member_big.T * w_tiled[None, :]                        # folds gamma
    b_row = jnp.tile(bias.astype(jnp.float32), P).reshape(1, Cp)

    # VMEM budget: double-buffered in+out blocks plus f32 temporaries; cap at
    # 64 MiB so it never exceeds v7x's physical VMEM.
    vmem_limit = int(min(64 * 2**20, max(32 * 2**20, 18 * bn * Cp * 4)))

    kernel = functools.partial(_group_norm_kernel, eps=float(eps))

    out_packed = pl.pallas_call(
        kernel,
        out_shape=jax.ShapeDtypeStruct((np8, Cp), x_2d.dtype),
        grid_spec=pltpu.PrefetchScalarGridSpec(
            num_scalar_prefetch=0,
            grid=grid,
            in_specs=[
                pl.BlockSpec((bn, Cp), lambda i: (i, 0)),
                pl.BlockSpec((Cp, Gp), lambda i: (0, 0)),
                pl.BlockSpec((Gp, Cp), lambda i: (0, 0)),
                pl.BlockSpec((Gp, Cp), lambda i: (0, 0)),
                pl.BlockSpec((1, Cp), lambda i: (0, 0)),
            ],
            out_specs=pl.BlockSpec((bn, Cp), lambda i: (i, 0)),
        ),
        compiler_params=pltpu.CompilerParams(
            dimension_semantics=("parallel",),
            vmem_limit_bytes=vmem_limit,
        ),
    )(x_packed, gmean, gback, gscale, b_row)

    out = out_packed.reshape(N_pad, C)
    if N_pad != N:
        out = out[:N]
    return out


def group_norm_forward(x, weight, bias, num_groups, eps=1e-5):
    """Mirrors fairseq GroupNorm.forward: accepts (T, B, C) or (B, C)."""
    shaped_input = x.ndim == 2
    if shaped_input:
        x = x[None, ...]
    T, B, C = x.shape
    x2 = x.reshape(T * B, C)
    y2 = group_norm_pallas(x2, weight, bias, num_groups, eps=eps)
    y = y2.reshape(T, B, C)
    if shaped_input:
        y = y[0]
    return y


def _reference(x, weight, bias, num_groups, eps=1e-5):
    # Pure-JAX reference matching F.group_norm on (N, C) rows.
    shaped_input = x.ndim == 2
    if shaped_input:
        x = x[None, ...]
    T, B, C = x.shape
    G = num_groups
    xg = x.reshape(T * B, G, C // G).astype(jnp.float32)
    mean = xg.mean(axis=-1, keepdims=True)
    var = xg.var(axis=-1, keepdims=True)  # biased
    y = (xg - mean) / jnp.sqrt(var + eps)
    y = y.reshape(T * B, C) * weight[None, :] + bias[None, :]
    y = y.reshape(T, B, C)
    if shaped_input:
        y = y[0]
    return y


if __name__ == "__main__":
    # Module config: GroupNorm(num_groups=4, num_channels=32)
    num_groups = 4
    num_channels = 32
    eps = 1e-5

    key = jax.random.PRNGKey(0)
    k_x, k_w, k_b, k_x2 = jax.random.split(key, 4)

    # Small (T, B, C) shape consistent with the module's forward.
    T, B, C = 8, 2, num_channels
    x = jax.random.normal(k_x, (T, B, C), dtype=jnp.float32)

    # Module init is ones/zeros; use non-trivial affine params here to exercise
    # the folded-gamma / beta path as well.
    weight = 1.0 + 0.1 * jax.random.normal(k_w, (num_channels,), dtype=jnp.float32)
    bias = 0.1 * jax.random.normal(k_b, (num_channels,), dtype=jnp.float32)

    y = group_norm_forward(x, weight, bias, num_groups, eps=eps)
    y = jax.block_until_ready(y)
    y_ref = _reference(x, weight, bias, num_groups, eps=eps)
    assert y.shape == x.shape
    assert jnp.allclose(y, y_ref, atol=1e-5, rtol=1e-5), "mismatch vs reference"

    # Second shape exercising row padding and a ragged multi-step grid.
    T2, B2 = 75, 2
    x2 = jax.random.normal(k_x2, (T2, B2, num_channels), dtype=jnp.float32)
    y2 = group_norm_forward(x2, weight, bias, num_groups, eps=eps)
    y2 = jax.block_until_ready(y2)
    y2_ref = _reference(x2, weight, bias, num_groups, eps=eps)
    assert jnp.allclose(y2, y2_ref, atol=1e-5, rtol=1e-5), "mismatch vs reference (ragged)"

    # 2-D input path (shaped_input branch of the fairseq forward).
    x3 = x[0]
    y3 = group_norm_forward(x3, weight, bias, num_groups, eps=eps)
    y3 = jax.block_until_ready(y3)
    y3_ref = _reference(x3, weight, bias, num_groups, eps=eps)
    assert jnp.allclose(y3, y3_ref, atol=1e-5, rtol=1e-5), "mismatch vs reference (2D)"

    print("KERNEL_OK")
</pallas_src>

<mosaic_0001>
module attributes {stable_mosaic.version = 11 : i64} {
  func.func @_group_norm_kernel(%arg0: i32, %arg1: memref<8x128xf32, #tpu.memory_space<vmem>>, %arg2: memref<128x16xf32, #tpu.memory_space<vmem>>, %arg3: memref<16x128xf32, #tpu.memory_space<vmem>>, %arg4: memref<16x128xf32, #tpu.memory_space<vmem>>, %arg5: memref<1x128xf32, #tpu.memory_space<vmem>>, %arg6: memref<8x128xf32, #tpu.memory_space<vmem>>) attributes {dimension_semantics = [#tpu.dimension_semantics<parallel>], iteration_bounds = array<i64: 1>, scalar_prefetch = 0 : i64, scratch_operands = 0 : i64, tpu.core_type = #tpu.core_type<tc>, window_params = [{transform_indices = @transform_0, window_bounds = array<i64: 8, 128>}, {pipeline_mode = #tpu.pipeline_mode<synchronous>, transform_indices = @transform_1, window_bounds = array<i64: 128, 16>}, {pipeline_mode = #tpu.pipeline_mode<synchronous>, transform_indices = @transform_2, window_bounds = array<i64: 16, 128>}, {pipeline_mode = #tpu.pipeline_mode<synchronous>, transform_indices = @transform_3, window_bounds = array<i64: 16, 128>}, {pipeline_mode = #tpu.pipeline_mode<synchronous>, transform_indices = @transform_4, window_bounds = array<i64: 1, 128>}, {transform_indices = @transform_5, window_bounds = array<i64: 8, 128>}]} {
    %c0 = arith.constant 0 : index
    %c0_0 = arith.constant 0 : index
    %0 = vector.load %arg1[%c0, %c0_0] : memref<8x128xf32, #tpu.memory_space<vmem>>, vector<8x128xf32>
    %c0_1 = arith.constant 0 : index
    %c0_2 = arith.constant 0 : index
    %1 = vector.load %arg2[%c0_1, %c0_2] : memref<128x16xf32, #tpu.memory_space<vmem>>, vector<128x16xf32>
    %cst = arith.constant dense<0.000000e+00> : vector<8x16xf32>
    %2 = tpu.matmul %0, %1, %cst {dimension_numbers = #tpu.dot_dimension_numbers<[1], [0], [0], [1], [0, 0, 1, 1], [], []>} : vector<8x128xf32>, vector<128x16xf32>, vector<8x16xf32> -> vector<8x16xf32>
    %c0_3 = arith.constant 0 : index
    %c0_4 = arith.constant 0 : index
    %3 = vector.load %arg3[%c0_3, %c0_4] : memref<16x128xf32, #tpu.memory_space<vmem>>, vector<16x128xf32>
    %cst_5 = arith.constant dense<0.000000e+00> : vector<8x128xf32>
    %4 = tpu.matmul %2, %3, %cst_5 {dimension_numbers = #tpu.dot_dimension_numbers<[1], [0], [0], [1], [0, 0, 1, 1], [], []>} : vector<8x16xf32>, vector<16x128xf32>, vector<8x128xf32> -> vector<8x128xf32>
    %5 = arith.subf %0, %4 : vector<8x128xf32>
    %6 = arith.mulf %5, %5 : vector<8x128xf32>
    %c0_6 = arith.constant 0 : index
    %c0_7 = arith.constant 0 : index
    %7 = vector.load %arg2[%c0_6, %c0_7] : memref<128x16xf32, #tpu.memory_space<vmem>>, vector<128x16xf32>
    %cst_8 = arith.constant dense<0.000000e+00> : vector<8x16xf32>
    %8 = tpu.matmul %6, %7, %cst_8 {dimension_numbers = #tpu.dot_dimension_numbers<[1], [0], [0], [1], [0, 0, 1, 1], [], []>} : vector<8x128xf32>, vector<128x16xf32>, vector<8x16xf32> -> vector<8x16xf32>
    %cst_9 = arith.constant 9.99999974E-6 : f32
    %9 = vector.broadcast %cst_9 : f32 to vector<8x16xf32>
    %10 = arith.addf %8, %9 : vector<8x16xf32>
    %11 = math.rsqrt %10 : vector<8x16xf32>
    %c0_10 = arith.constant 0 : index
    %c0_11 = arith.constant 0 : index
    %12 = vector.load %arg4[%c0_10, %c0_11] : memref<16x128xf32, #tpu.memory_space<vmem>>, vector<16x128xf32>
    %cst_12 = arith.constant dense<0.000000e+00> : vector<8x128xf32>
    %13 = tpu.matmul %11, %12, %cst_12 {dimension_numbers = #tpu.dot_dimension_numbers<[1], [0], [0], [1], [0, 0, 1, 1], [], []>} : vector<8x16xf32>, vector<16x128xf32>, vector<8x128xf32> -> vector<8x128xf32>
    %14 = arith.mulf %5, %13 : vector<8x128xf32>
    %c0_13 = arith.constant 0 : index
    %c0_14 = arith.constant 0 : index
    %15 = vector.load %arg5[%c0_13, %c0_14] : memref<1x128xf32, #tpu.memory_space<vmem>>, vector<1x128xf32>
    %16 = vector.broadcast %15 : vector<1x128xf32> to vector<8x128xf32>
    %17 = arith.addf %14, %16 : vector<8x128xf32>
    %c0_15 = arith.constant 0 : index
    %c0_16 = arith.constant 0 : index
    %18 = vector.load %arg6[%c0_15, %c0_16] : memref<8x128xf32, #tpu.memory_space<vmem>>, vector<8x128xf32>
    tpu.vector_store %arg6[%c0_15, %c0_16], %17 {strides = array<i32>} : memref<8x128xf32, #tpu.memory_space<vmem>>, vector<8x128xf32>,
    return
  }
  func.func @transform_0(%arg0: i32) -> (i32, i32) {
    %c0_i32 = arith.constant 0 : i32
    %c0_i32_0 = arith.constant 0 : i32
    return %arg0, %c0_i32 : i32, i32
  }
  func.func @transform_1(%arg0: i32) -> (i32, i32) {
    %c0_i32 = arith.constant 0 : i32
    %c0_i32_0 = arith.constant 0 : i32
    %c0_i32_1 = arith.constant 0 : i32
    return %c0_i32, %c0_i32_0 : i32, i32
  }
  func.func @transform_2(%arg0: i32) -> (i32, i32) {
    %c0_i32 = arith.constant 0 : i32
    %c0_i32_0 = arith.constant 0 : i32
    %c0_i32_1 = arith.constant 0 : i32
    return %c0_i32, %c0_i32_0 : i32, i32
  }
  func.func @transform_3(%arg0: i32) -> (i32, i32) {
    %c0_i32 = arith.constant 0 : i32
    %c0_i32_0 = arith.constant 0 : i32
    %c0_i32_1 = arith.constant 0 : i32
    return %c0_i32, %c0_i32_0 : i32, i32
  }
  func.func @transform_4(%arg0: i32) -> (i32, i32) {
    %c0_i32 = arith.constant 0 : i32
    %c0_i32_0 = arith.constant 0 : i32
    %c0_i32_1 = arith.constant 0 : i32
    return %c0_i32, %c0_i32_0 : i32, i32
  }
  func.func @transform_5(%arg0: i32) -> (i32, i32) {
    %c0_i32 = arith.constant 0 : i32
    %c0_i32_0 = arith.constant 0 : i32
    return %arg0, %c0_i32 : i32, i32
  }
}

</mosaic_0001>

<bundles_post_ra>
// kernel: tpu_custom_call.1
= control target key start
LH: loop header
LB: loop body
LE: loop exit
PB: predicated region body
PF: predicated region fallthrough
CT: control target
= control target key end

     0   :  { %v510_v1 = vmov 0.0   ;;  %vm511_vm0 = vmmov 0   ;;  %s670_s0 = inlined_call_operand.vmem [shape: f32[8,128], index: 0, kind: input, shape index: {}]   ;;  %s671_s1 = inlined_call_operand.vmem [shape: f32[128,16], index: 1, kind: input, shape index: {}]   ;;  %s672_s2 = inlined_call_operand.vmem [shape: f32[16,128], index: 2, kind: input, shape index: {}]   ;;  %s673_s3 = inlined_call_operand.vmem [shape: f32[16,128], index: 3, kind: input, shape index: {}]   ;;  %s674_s4 = inlined_call_operand.vmem [shape: f32[1,128], index: 4, kind: input, shape index: {}]   ;;  %s675_s5 = inlined_call_operand.hbm [shape: f32[8,128], index: 5, kind: output, shape index: {}]  }
   0x1   :  { %v546_v0 = vld [vmem:[%s671_s1 + $0x78] sm:$0xff]  ;;  %399 = vmatprep.subr.mxu0 %v510_v1  ;;  %v552_v2 = vld [vmem:[%s671_s1 + $0x70] sm:$0xff]  ;;  %431 = vmatprep.mubr.msk.f32.mxu0 %vm511_vm0, %v510_v1  ;;  %v562_v3 = vld [vmem:[%s671_s1 + $0x68] sm:$0xff] }
   0x2   :  { %400 = vmatpush3.msra.mxu0 %v546_v0  ;;  %434 = vmatprep.subr.mxu1 %v510_v1  ;;  %v34_v4 = vld [vmem:[%s671_s1 + $0x60] sm:$0xff]  ;;  %v109_v5 = vld [vmem:[%s672_s2 + $0x8] sm:$0xff] }
   0x3   :  { %401 = vmatprep.subr.mxu0 %v510_v1  ;;  %438 = vmatprep.mubr.msk.f32.mxu1 %vm511_vm0, %v510_v1 }
   0x4   :  { %402 = vmatpush3.msra.mxu0 %v552_v2  ;;  %435 = vmatpush3.msra.mxu1 %v109_v5 }
   0x5   :  { %403 = vmatprep.subr.mxu0 %v510_v1 }
   0x6   :  { %404 = vmatpush3.msra.mxu0 %v562_v3 }
   0x7   :  { %10 = vsyncpa [#allocation3], 0  ;;  %405 = vmatprep.subr.mxu0 %v510_v1  ;;  %v33_v6 = vld [vmem:[%s671_s1 + $0x58] sm:$0xff]  ;;  %436 = vmatprep.subr.mxu1 %v510_v1  ;;  %v32_v7 = vld [vmem:[%s671_s1 + $0x50] sm:$0xff]  ;;  %vm110_vm1 = vcmask 130048   ;;  %s512_s9 = smov [#allocation2]  }
   0x8   :  { %406 = vmatpush3.msra.mxu0 %v34_v4  ;;  %v31_v8 = vld [vmem:[%s671_s1 + $0x48] sm:$0xff]  ;;  %v30_v9 = vld [vmem:[%s671_s1 + $0x40] sm:$0xff]  ;;  %v29_v10 = vld [vmem:[%s671_s1 + $0x38] sm:$0xff]  ;;  %s348_s10 = sshll.u32 %s512_s9, 4  ;;  %s349_s10 = int_to_ptr.vmem [resolvable:$true] %s348_s10 }
   0x9   :  { %407 = vmatprep.subr.mxu0 %v510_v1  ;;  %v28_v11 = vld [vmem:[%s671_s1 + $0x30] sm:$0xff]  ;;  %v27_v12 = vld [vmem:[%s671_s1 + $0x28] sm:$0xff]  ;;  %v26_v13 = vld [vmem:[%s671_s1 + $0x20] sm:$0xff]  ;;  %p493_p1 = scmp.lt.s32.totalorder %s349_s10, %s349_s10 }
   0xa   :  { %408 = vmatpush3.msra.mxu0 %v33_v6  ;;  %v25_v14 = vld [vmem:[%s671_s1 + $0x18] sm:$0xff]  ;;  %v24_v15 = vld [vmem:[%s671_s1 + $0x10] sm:$0xff]  ;;  %v23_v16 = vld [vmem:[%s671_s1 + $0x8] sm:$0xff] }
   0xb   :  { %409 = vmatprep.subr.mxu0 %v510_v1  ;;  %v22_v17 = vld [vmem:[%s671_s1] sm:$0xff]  ;;  %v258_v26 = vld [vmem:[%s673_s3 + $0x8] sm:$0xff] }
   0xc   :  { %410 = vmatpush3.msra.mxu0 %v32_v7  ;;  %v21_v18 = vld [vmem:[%s670_s0] sm:$0xff] }
   0xd   :  { %411 = vmatprep.subr.mxu0 %v510_v1  ;;  %v108_v19 = vld [vmem:[%s672_s2] sm:$0xff] }
   0xe   :  { %412 = vmatpush3.msra.mxu0 %v31_v8  ;;  %437 = vmatpush3.msra.mxu1 %v108_v19  ;;  %v257_v27 = vld [vmem:[%s673_s3] sm:$0xff]  ;;  %s488_s3 = scalar_lea.vmem %s349_s10, 128 }
   0xf   :  { %413 = vmatprep.subr.mxu0 %v510_v1  ;;  %441 = vmatprep.subr.mxu1 %v510_v1  ;;  %v358_v33 = vld [vmem:[%s674_s4] ss:$0 sm:$0xff]  ;;  %p489_p0 = scmp.ne.s32.totalorder %s349_s10, %s488_s3  ;;  %p494_p2 = scmp.lt.s32.totalorder %s488_s3, %s488_s3 }
  0x10   :  { %414 = vmatpush3.msra.mxu0 %v30_v9 }
  0x11   :  { %415 = vmatprep.subr.mxu0 %v510_v1  ;;  %p495_p3 = por %p494_p2, %p493_p1 }
  0x12   :  { %416 = vmatpush3.msra.mxu0 %v29_v10 }
  0x13   :  { %417 = vmatprep.subr.mxu0 %v510_v1  ;;  %p496_p4 = pnand %p495_p3, %p489_p0 }
  0x14   :  { %418 = vmatpush3.msra.mxu0 %v28_v11 }
  0x15   :  { %419 = vmatprep.subr.mxu0 %v510_v1 }
  0x16   :  { %420 = vmatpush3.msra.mxu0 %v27_v12 }
  0x17   :  { %421 = vmatprep.subr.mxu0 %v510_v1 }
  0x18   :  { %422 = vmatpush3.msra.mxu0 %v26_v13 }
  0x19   :  { %423 = vmatprep.subr.mxu0 %v510_v1 }
  0x1a   :  { %424 = vmatpush3.msra.mxu0 %v25_v14 }
  0x1b   :  { %425 = vmatprep.subr.mxu0 %v510_v1 }
  0x1c   :  { %426 = vmatpush3.msra.mxu0 %v24_v15 }
  0x1d   :  { %427 = vmatprep.subr.mxu0 %v510_v1 }
  0x1e   :  { %428 = vmatpush3.msra.mxu0 %v23_v16 }
  0x1f   :  { %429 = vmatprep.subr.mxu0 %v510_v1 }
  0x20   :  { %430 = vmatpush3.msra.mxu0 %v22_v17 }
  0x21   :  { %432 = vmatmul.mubr.f32.vlgmr.msra.gmra.mxu0 %v21_v18  ;;  %476 = vmatprep.subr.mxu0 %v510_v1 }
  0x22   :  { %480 = vmatprep.mubr.msk.f32.mxu0 %vm511_vm0, %v510_v1  ;;  %477 = vmatpush3.msra.mxu0 %v258_v26 }
  0x23   :  { %478 = vmatprep.subr.mxu0 %v510_v1 }
  0x24   :  { %479 = vmatpush3.msra.mxu0 %v257_v27 }
  0xe1   :  { %v104_v20 = vpop.f32.mrf.mxu0 }
  0xe2   :  { %439 = vmatmul.mubr.msk.f32.vlgmr.msra.gmra.mxu1 %vm110_vm1, %v104_v20 }
  0xe3   :  { %v433_v21 = vpop.f32.mrf.mxu0  ;;  %442 = vmatpush3.msra.mxu1 %v546_v0  ;;  %473 = vmatprep.mubr.msk.f32.mxu1 %vm511_vm0, %v510_v1 }
  0xe4   :  { %443 = vmatprep.subr.mxu1 %v510_v1 }
  0xe5   :  { %444 = vmatpush3.msra.mxu1 %v552_v2 }
  0xe6   :  { %445 = vmatprep.subr.mxu1 %v510_v1 }
  0xe7   :  { %446 = vmatpush3.msra.mxu1 %v562_v3 }
  0xe8   :  { %447 = vmatprep.subr.mxu1 %v510_v1 }
  0xe9   :  { %448 = vmatpush3.msra.mxu1 %v34_v4 }
  0xea   :  { %449 = vmatprep.subr.mxu1 %v510_v1 }
  0xeb   :  { %450 = vmatpush3.msra.mxu1 %v33_v6 }
  0xec   :  { %451 = vmatprep.subr.mxu1 %v510_v1 }
  0xed   :  { %452 = vmatpush3.msra.mxu1 %v32_v7 }
  0xee   :  { %453 = vmatprep.subr.mxu1 %v510_v1 }
  0xef   :  { %454 = vmatpush3.msra.mxu1 %v31_v8 }
  0xf0   :  { %455 = vmatprep.subr.mxu1 %v510_v1 }
  0xf1   :  { %456 = vmatpush3.msra.mxu1 %v30_v9 }
  0xf2   :  { %457 = vmatprep.subr.mxu1 %v510_v1 }
  0xf3   :  { %458 = vmatpush3.msra.mxu1 %v29_v10 }
  0xf4   :  { %459 = vmatprep.subr.mxu1 %v510_v1 }
  0xf5   :  { %460 = vmatpush3.msra.mxu1 %v28_v11 }
  0xf6   :  { %461 = vmatprep.subr.mxu1 %v510_v1 }
  0xf7   :  { %462 = vmatpush3.msra.mxu1 %v27_v12 }
  0xf8   :  { %463 = vmatprep.subr.mxu1 %v510_v1 }
  0xf9   :  { %464 = vmatpush3.msra.mxu1 %v26_v13 }
  0xfa   :  { %465 = vmatprep.subr.mxu1 %v510_v1 }
  0xfb   :  { %466 = vmatpush3.msra.mxu1 %v25_v14 }
  0xfc   :  { %467 = vmatprep.subr.mxu1 %v510_v1 }
  0xfd   :  { %468 = vmatpush3.msra.mxu1 %v24_v15 }
  0xfe   :  { %469 = vmatprep.subr.mxu1 %v510_v1 }
  0xff   :  { %470 = vmatpush3.msra.mxu1 %v23_v16 }
 0x100   :  { %471 = vmatprep.subr.mxu1 %v510_v1 }
 0x101   :  { %472 = vmatpush3.msra.mxu1 %v22_v17 }
 0x1a2   :  { %v180_v22 = vpop.f32.mrf.mxu1 }
 0x1a3   :  { %v184_v23 = vsub.f32 %v21_v18, %v180_v22 }
 0x1a4   :  { %v440_v24 = vpop.f32.mrf.mxu1 }
 0x1a5   :  { %v185_v25 = vmul.f32 %v184_v23, %v184_v23 }
 0x1a7   :  { %474 = vmatmul.mubr.f32.vlgmr.msra.gmra.mxu1 %v185_v25 }
 0x267   :  { %v252_v28 = vpop.f32.mrf.mxu1 }
 0x268   :  { %v253_v29 = vadd.f32 1e-05, %v252_v28 }
 0x269   :  { %v475_v30 = vpop.f32.mrf.mxu1 }
 0x26a   :  { %486 = vrsqrt.f32 %v253_v29 }
 0x277   :  { %v487_v31 = vpop.eup %486 }
 0x278   :  { %481 = vmatmul.mubr.msk.f32.vlgmr.msra.gmra.mxu0 %vm110_vm1, %v487_v31 }
 0x338   :  { %v328_v32 = vpop.f32.mrf.mxu0 }
 0x339   :  { %v332_v34 = vmul.f32 %v328_v32, %v184_v23 }
 0x33a   :  { %v482_v35 = vpop.f32.mrf.mxu0 }
 0x33b   :  { %v340_v36 = vadd.f32 %v358_v33, %v332_v34 }
 0x33d   :  { %341 = vst [vmem:[#allocation2] sm:$0xff] %v340_v36 }
 0x33e   :  { %499 = shalt.err (!%p496_p4)
}
 0x33f   :  { %351 = dma.vmem_to_hbm [thread:$0]  %s349_s10, 128, %s675_s5, [#allocation3]  }
 0x340   :  { %508 = dma.done.wait [#allocation3], 128  }
 0x341   :  { %509 = vsyncadd [#allocation3], 4294967168 }
 0x342   :  { %355 = vsyncpa [#allocation3], 1 }

</bundles_post_ra>
